<compile_context>
chip_gen: v6e
topology: v6e:2x2x1
jax: 0.10.0
libtpu: 0.0.40
codegen_flags: <defaults>
</compile_context>

<pallas_src>
import math

import numpy as np
import jax
import jax.numpy as jnp
from jax.experimental import pallas as pl
from jax.experimental.pallas import tpu as pltpu

LRELU_SLOPE = 0.1  # HiFi-GAN standard

_VMEM_BUDGET = 20 * 1024 * 1024   # per-call tile-sizing budget (safe on v5e/v6e/v7x)
_VMEM_LIMIT = 32 * 1024 * 1024    # explicit scoped-VMEM limit handed to Mosaic


# ----------------------------------------------------------------------------
# Pallas conv1d kernel (dilated, pre-padded input, fused lrelu/bias/res/tanh)
# ----------------------------------------------------------------------------
def _make_conv1d_kernel(K, dilation, slope_in, tanh_out, fuse_taps, vpu_cout1,
                        has_halo, has_res, compute_dtype):
    def kernel(*refs):
        i = 0
        x_ref = refs[i]; i += 1
        xh_ref = None
        if has_halo:
            xh_ref = refs[i]; i += 1
        w_ref = refs[i]; i += 1
        b_ref = refs[i]; i += 1
        res_ref = None
        if has_res:
            res_ref = refs[i]; i += 1
        o_ref = refs[i]

        x = x_ref[0]                                   # (C_in, TILE [+ halo])
        if has_halo:
            x = jnp.concatenate([x, xh_ref[0]], axis=-1)
        xf = x.astype(jnp.float32)
        if slope_in is not None:
            # fused pre-activation; leaky_relu(0) == 0 so zero padding is safe
            xf = jnp.where(xf >= 0, xf, slope_in * xf)
        xc = xf.astype(compute_dtype)

        t_out = o_ref.shape[2]
        if fuse_taps:
            # stack the K shifted views along sublanes -> one big contraction
            parts = [xc[:, k * dilation:k * dilation + t_out] for k in range(K)]
            xs = parts[0] if K == 1 else jnp.concatenate(parts, axis=0)
            if vpu_cout1:
                # C_out == 1: skip the 1-row MXU matmul, do a VPU MAC + reduce
                acc = jnp.sum(xs.astype(jnp.float32) * w_ref[...],
                              axis=0, keepdims=True)
            else:
                acc = jnp.dot(w_ref[...], xs, preferred_element_type=jnp.float32)
        else:
            c_out = o_ref.shape[1]
            acc = jnp.zeros((c_out, t_out), jnp.float32)
            for k in range(K):  # K is small -> fully unrolled taps
                acc = acc + jnp.dot(w_ref[k],
                                    xc[:, k * dilation:k * dilation + t_out],
                                    preferred_element_type=jnp.float32)

        acc = acc + b_ref[...]                         # (C_out, 1) broadcast
        if has_res:
            acc = acc + res_ref[0].astype(jnp.float32)  # fused residual add
        if tanh_out:
            acc = jnp.tanh(acc)
        o_ref[0] = acc.astype(o_ref.dtype)

    return kernel


def conv1d_pallas(x, w, b, *, dilation=1, padding=0, slope_in=None, tanh_out=False,
                  residual=None, out_dtype=jnp.float32, compute_dtype=jnp.bfloat16,
                  tile_t=2048):
    """PyTorch Conv1d semantics (cross-correlation).

    x: (B, C_in, T); w: (C_out, C_in, K) [PyTorch layout]; b: (C_out,)
    padding: int (symmetric) or (pad_left, pad_right)
    residual: optional (B, C_out, T_out) fused into the output (acc += residual)
    """
    B, C_in, T = x.shape
    C_out, C_in_w, K = w.shape
    assert C_in_w == C_in
    if isinstance(padding, (tuple, list)):
        pad_l, pad_r = int(padding[0]), int(padding[1])
    else:
        pad_l = pad_r = int(padding)
    assert pad_l >= 0 and pad_r >= 0
    halo = dilation * (K - 1)
    T_out = T + pad_l + pad_r - halo
    assert T_out > 0
    if residual is not None:
        assert residual.shape == (B, C_out, T_out)

    fuse_taps = C_in < 128            # fold taps into contraction for small C_in
    vpu_cout1 = fuse_taps and C_out == 1

    b2 = jnp.asarray(b, jnp.float32).reshape(C_out, 1)
    if fuse_taps:
        # row order k*C_in + ci  (matches the in-kernel stacked input)
        w_stack = jnp.transpose(w, (0, 2, 1)).reshape(C_out, K * C_in)
        if vpu_cout1:
            w_arg = w_stack.reshape(K * C_in, 1).astype(jnp.float32)
        else:
            w_arg = w_stack.astype(compute_dtype)
    else:
        w_arg = jnp.transpose(w, (2, 0, 1)).astype(compute_dtype)  # (K, C_out, C_in)

    halo_blk = max(128, ((halo + 127) // 128) * 128)   # lane-aligned halo block

    def vmem_bytes(t):
        x_b = np.dtype(x.dtype).itemsize
        o_b = np.dtype(out_dtype).itemsize
        c_b = np.dtype(compute_dtype).itemsize
        r_b = np.dtype(residual.dtype).itemsize if residual is not None else 0
        dbl = 2 * (C_in * (t + halo_blk) * x_b + C_out * t * (o_b + r_b))
        stack_rows = K * C_in if fuse_taps else C_in
        inner = stack_rows * t * c_b + C_out * t * 4 + C_in * (t + halo_blk) * 4
        return dbl + inner + 2 * int(np.prod(w.shape)) * 4

    # choose the largest tile that fits the VMEM budget (sized for v7x)
    tile = (max(int(tile_t), halo_blk) // halo_blk) * halo_blk
    while tile > halo_blk and vmem_bytes(tile) > _VMEM_BUDGET:
        tile = max(halo_blk, ((tile // 2) // halo_blk) * halo_blk)
    tiled = T_out > tile

    kernel = _make_conv1d_kernel(K, dilation, slope_in, tanh_out, fuse_taps,
                                 vpu_cout1, tiled, residual is not None,
                                 compute_dtype)
    w_ndim = w_arg.ndim

    # TODO(synk): the per-conv jnp.pad is one extra HBM round trip per layer;
    #             carrying a persistently padded time layout (or masking edge
    #             taps in-kernel) would remove it.
    if tiled:
        n_tiles = -(-T_out // tile)
        L_in = n_tiles * tile + halo_blk          # so the halo block is in-bounds
        x_pad = jnp.pad(x, ((0, 0), (0, 0), (pad_l, L_in - T - pad_l)))
        hs = tile // halo_blk
        in_specs = [
            pl.BlockSpec((1, C_in, tile), lambda bb, ti: (bb, 0, ti)),
            pl.BlockSpec((1, C_in, halo_blk), lambda bb, ti: (bb, 0, (ti + 1) * hs)),
            pl.BlockSpec(w_arg.shape, lambda bb, ti: (0,) * w_ndim),
            pl.BlockSpec((C_out, 1), lambda bb, ti: (0, 0)),
        ]
        operands = [x_pad, x_pad, w_arg, b2]
        if residual is not None:
            in_specs.append(pl.BlockSpec((1, C_out, tile), lambda bb, ti: (bb, 0, ti)))
            operands.append(residual)
        out_spec = pl.BlockSpec((1, C_out, tile), lambda bb, ti: (bb, 0, ti))
        grid = (B, n_tiles)
        dims = ("parallel", "parallel")
    else:
        L_in = T_out + halo                       # == T + pad_l + pad_r
        x_pad = jnp.pad(x, ((0, 0), (0, 0), (pad_l, L_in - T - pad_l)))
        in_specs = [
            pl.BlockSpec((1, C_in, L_in), lambda bb: (bb, 0, 0)),
            pl.BlockSpec(w_arg.shape, lambda bb: (0,) * w_ndim),
            pl.BlockSpec((C_out, 1), lambda bb: (0, 0)),
        ]
        operands = [x_pad, w_arg, b2]
        if residual is not None:
            in_specs.append(pl.BlockSpec((1, C_out, T_out), lambda bb: (bb, 0, 0)))
            operands.append(residual)
        out_spec = pl.BlockSpec((1, C_out, T_out), lambda bb: (bb, 0, 0))
        grid = (B,)
        dims = ("parallel",)

    return pl.pallas_call(
        kernel,
        out_shape=jax.ShapeDtypeStruct((B, C_out, T_out), out_dtype),
        grid=grid,
        in_specs=in_specs,
        out_specs=out_spec,
        compiler_params=pltpu.CompilerParams(
            dimension_semantics=dims, vmem_limit_bytes=_VMEM_LIMIT),
    )(*operands)


def conv_transpose1d_pallas(x, w, b, *, stride, padding, slope_in=None,
                            out_dtype=jnp.float32, compute_dtype=jnp.bfloat16,
                            tile_t=2048):
    """PyTorch ConvTranspose1d.  x: (B, C_in, T), w: (C_in, C_out, K), b: (C_out,)."""
    B, C_in, T = x.shape
    C_in_w, C_out, K = w.shape
    assert C_in_w == C_in
    eff_pad = K - 1 - padding
    assert eff_pad >= 0
    w_eq = jnp.flip(jnp.transpose(w, (1, 0, 2)), axis=-1)   # equivalent conv weights

    if stride > 1 and K - 2 * padding == stride:
        # Polyphase: y[q*stride + r] = sum_m w_eq[j0(r)+m*stride] * x[q + m - pad_l(r)]
        # -> one small conv per phase on the un-stuffed input, then interleave.
        phases = []
        for r in range(stride):
            q = (eff_pad - r) // stride
            j0 = (eff_pad - r) - stride * q
            taps = list(range(j0, K, stride))
            M = len(taps)
            pad_l, pad_r = q, M - 1 - q
            assert M >= 1 and pad_l >= 0 and pad_r >= 0
            w_r = w_eq[:, :, taps]                           # (C_out, C_in, M)
            y_r = conv1d_pallas(x, w_r, b, dilation=1, padding=(pad_l, pad_r),
                                slope_in=slope_in, out_dtype=out_dtype,
                                compute_dtype=compute_dtype, tile_t=tile_t)
            assert y_r.shape == (B, C_out, T)
            phases.append(y_r)
        # TODO(synk): interleave inside the conv kernel (sub-pixel output layout)
        #             to avoid this extra full-tensor reshuffle in HBM.
        return jnp.stack(phases, axis=-1).reshape(B, C_out, T * stride)

    # Fallback (stride == 1 or non-standard padding): zero-stuffing + conv.
    if stride > 1:
        xz = jnp.zeros((B, C_in, (T - 1) * stride + 1), x.dtype)
        xz = xz.at[:, :, ::stride].set(x)
    else:
        xz = x
    return conv1d_pallas(xz, w_eq, b, dilation=1, padding=eff_pad,
                         slope_in=slope_in, out_dtype=out_dtype,
                         compute_dtype=compute_dtype, tile_t=tile_t)


# ----------------------------------------------------------------------------
# ResBlock1 (HiFi-GAN): two conv stacks per dilation, fused residual add
# ----------------------------------------------------------------------------
def get_padding(kernel_size, dilation):
    return (kernel_size * dilation - dilation) // 2


def resblock1_forward(x, blk_params, kernel_size, dilations, *,
                      act_dtype, compute_dtype, tile_t):
    for i, d in enumerate(dilations):
        w1, b1, w2, b2 = blk_params[i]
        xt = conv1d_pallas(x, w1, b1, dilation=d,
                           padding=get_padding(kernel_size, d),
                           slope_in=LRELU_SLOPE, out_dtype=act_dtype,
                           compute_dtype=compute_dtype, tile_t=tile_t)
        # second conv with the residual add fused into the kernel
        x = conv1d_pallas(xt, w2, b2, dilation=1,
                          padding=get_padding(kernel_size, 1),
                          slope_in=LRELU_SLOPE, residual=x, out_dtype=act_dtype,
                          compute_dtype=compute_dtype, tile_t=tile_t)
    return x


# ----------------------------------------------------------------------------
# Generator
# ----------------------------------------------------------------------------
class GeneratorPallas:
    # TODO(synk): weight_norm parametrization is not modeled; when loading a
    #             trained PyTorch checkpoint fold g * v / ||v|| into the weights.
    def __init__(self, *, upsampling_rates, upsampling_kernel_sizes,
                 upsampling_initial_channel, resblock_kernel_sizes,
                 resblock_dilation_sizes, resblock='1', n_mels=80, key=None,
                 act_dtype=jnp.bfloat16, compute_dtype=jnp.bfloat16, tile_t=2048):
        assert resblock == '1'  # TODO(synk): ResBlock2 variant not wired (default is "1")
        self.upsampling_rates = upsampling_rates
        self.upsampling_kernel_sizes = upsampling_kernel_sizes
        self.resblock_kernel_sizes = resblock_kernel_sizes
        self.resblock_dilation_sizes = resblock_dilation_sizes
        self.num_kernels = len(resblock_kernel_sizes)
        self.num_upsamples = len(upsampling_rates)
        self.n_mels = n_mels
        self.act_dtype = act_dtype
        self.compute_dtype = compute_dtype
        self.tile_t = tile_t

        key = jax.random.PRNGKey(0) if key is None else key

        def next_key():
            nonlocal key
            key, sub = jax.random.split(key)
            return sub

        def kaiming(shape, fan_in):
            return (jax.random.normal(next_key(), shape, jnp.float32)
                    * math.sqrt(2.0 / fan_in))

        # conv_pre: Conv1d(n_mels, C0, 7, 1, pad=3)
        C0 = upsampling_initial_channel
        self.conv_pre_w = kaiming((C0, n_mels, 7), n_mels * 7)
        self.conv_pre_b = jnp.zeros((C0,), jnp.float32)

        # upsampling ConvTranspose1d layers (PyTorch weight layout: C_in, C_out, K)
        self.ups = []
        for i, (u, k) in enumerate(zip(upsampling_rates, upsampling_kernel_sizes)):
            cin = C0 // (2 ** i)
            cout = C0 // (2 ** (i + 1))
            w = kaiming((cin, cout, k), cout * k)
            b = jnp.zeros((cout,), jnp.float32)
            self.ups.append((w, b, u, k))

        # resblocks
        self.resblocks = []
        ch = C0
        for i in range(self.num_upsamples):
            ch = C0 // (2 ** (i + 1))
            for (k, dils) in zip(resblock_kernel_sizes, resblock_dilation_sizes):
                blk = []
                for _d in dils:
                    w1 = kaiming((ch, ch, k), ch * k)
                    b1 = jnp.zeros((ch,), jnp.float32)
                    w2 = kaiming((ch, ch, k), ch * k)
                    b2 = jnp.zeros((ch,), jnp.float32)
                    blk.append((w1, b1, w2, b2))
                self.resblocks.append((blk, k, dils))

        # conv_post: Conv1d(ch, 1, 7, 1, pad=3)
        self.conv_post_w = kaiming((1, ch, 7), ch * 7)
        self.conv_post_b = jnp.zeros((1,), jnp.float32)

        # Fold the "xs / num_kernels" averaging of stage i into the weights of
        # the next conv that consumes it (ups[i+1] or conv_post). Valid because
        # conv(leaky_relu(s*x)) == (s*W)*leaky_relu(x) + b for s > 0.
        inv_nk = 1.0 / float(self.num_kernels)
        folded = []
        for i, (w, b, u, k) in enumerate(self.ups):
            if i > 0:
                w = w * inv_nk
            folded.append((w, b, u, k))
        self.ups = folded
        self.conv_post_w = self.conv_post_w * inv_nk

    def __call__(self, x):
        act = self.act_dtype
        cd = self.compute_dtype
        tt = self.tile_t
        # x: (B, n_mels, T)
        x = conv1d_pallas(x, self.conv_pre_w, self.conv_pre_b, dilation=1,
                          padding=3, out_dtype=act, compute_dtype=cd, tile_t=tt)
        for i in range(self.num_upsamples):
            w, b, u, k = self.ups[i]
            # leaky_relu(x, 0.1) fused as pre-activation inside the kernel
            x = conv_transpose1d_pallas(x, w, b, stride=u, padding=(k - u) // 2,
                                        slope_in=LRELU_SLOPE, out_dtype=act,
                                        compute_dtype=cd, tile_t=tt)
            xs = None
            for j in range(self.num_kernels):
                blk, kk, dils = self.resblocks[i * self.num_kernels + j]
                out = resblock1_forward(x, blk, kk, dils, act_dtype=act,
                                        compute_dtype=cd, tile_t=tt)
                xs = out if xs is None else xs + out
            x = xs  # the /num_kernels averaging is folded into the next conv's weights
        # final leaky_relu (default slope 0.01) + conv_post + tanh, all fused, f32 out
        x = conv1d_pallas(x, self.conv_post_w, self.conv_post_b, dilation=1,
                          padding=3, slope_in=0.01, tanh_out=True,
                          out_dtype=jnp.float32, compute_dtype=cd, tile_t=tt)
        return x


if __name__ == "__main__":
    key = jax.random.PRNGKey(0)
    k_param, k_in, k1, k2, k3, k4, k5 = jax.random.split(key, 7)

    # -------- unit check: tiled dilated conv vs. lax reference (f32 compute) ----
    def conv1d_ref(x, w, b, dilation, pad_l, pad_r):
        xp = jnp.pad(x, ((0, 0), (0, 0), (pad_l, pad_r)))
        y = jax.lax.conv_general_dilated(
            xp, w, window_strides=(1,), padding='VALID', rhs_dilation=(dilation,),
            dimension_numbers=('NCH', 'OIH', 'NCH'))
        return y + b[None, :, None]

    xc = jax.random.normal(k1, (2, 16, 300), jnp.float32)
    wc = jax.random.normal(k2, (24, 16, 3), jnp.float32) * 0.2
    bc = jax.random.normal(k3, (24,), jnp.float32) * 0.1
    y_pl = conv1d_pallas(xc, wc, bc, dilation=3, padding=3,
                         compute_dtype=jnp.float32, out_dtype=jnp.float32,
                         tile_t=128)
    y_rf = conv1d_ref(xc, wc, bc, 3, 3, 3)
    assert y_pl.shape == y_rf.shape
    assert bool(jnp.max(jnp.abs(y_pl - y_rf)) < 5e-2), "conv1d mismatch"

    # -------- unit check: polyphase ConvTranspose1d vs. zero-stuffed reference --
    xt = jax.random.normal(k4, (2, 16, 150), jnp.float32)
    wt = jax.random.normal(k5, (16, 8, 4), jnp.float32) * 0.2
    bt = jnp.zeros((8,), jnp.float32)
    y_tp = conv_transpose1d_pallas(xt, wt, bt, stride=2, padding=1,
                                   compute_dtype=jnp.float32,
                                   out_dtype=jnp.float32, tile_t=128)
    xz = jnp.zeros((2, 16, 299), jnp.float32).at[:, :, ::2].set(xt)
    w_eq = jnp.flip(jnp.transpose(wt, (1, 0, 2)), axis=-1)
    y_tr = conv1d_ref(xz, w_eq, bt, 1, 2, 2)
    assert y_tp.shape == y_tr.shape == (2, 8, 300)
    assert bool(jnp.max(jnp.abs(y_tp - y_tr)) < 5e-2), "conv_transpose mismatch"

    # -------- full generator forward ----------------------------------------
    n_mels = 16
    gen = GeneratorPallas(
        upsampling_rates=[2, 2],
        upsampling_kernel_sizes=[4, 4],
        upsampling_initial_channel=32,
        resblock_kernel_sizes=[3, 5],
        resblock_dilation_sizes=[[1, 3], [1, 3]],
        resblock='1',
        n_mels=n_mels,
        key=k_param,
        tile_t=256,   # small tile so the time-tiled path is exercised at this size
    )
    B, T = 2, 256
    x = jax.random.normal(k_in, (B, n_mels, T), jnp.float32)

    fwd = jax.jit(gen.__call__)
    y = fwd(x)
    jax.block_until_ready(y)

    # upsampled by prod(upsampling_rates)=4, single output channel
    assert y.shape == (B, 1, T * 4), y.shape
    assert bool(jnp.all(jnp.isfinite(y)))
    print("KERNEL_OK")
</pallas_src>

<mosaic_0001>
module attributes {stable_mosaic.version = 11 : i64} {
  func.func @kernel(%arg0: i32, %arg1: i32, %arg2: memref<1x16x128xf32, #tpu.memory_space<vmem>>, %arg3: memref<1x16x128xf32, #tpu.memory_space<vmem>>, %arg4: memref<24x48xf32, #tpu.memory_space<vmem>>, %arg5: memref<24x1xf32, #tpu.memory_space<vmem>>, %arg6: memref<1x24x128xf32, #tpu.memory_space<vmem>>) attributes {dimension_semantics = [#tpu.dimension_semantics<parallel>, #tpu.dimension_semantics<parallel>], iteration_bounds = array<i64: 2, 3>, scalar_prefetch = 0 : i64, scratch_operands = 0 : i64, tpu.core_type = #tpu.core_type<tc>, window_params = [{transform_indices = @transform_0, window_bounds = array<i64: 1, 16, 128>}, {transform_indices = @transform_1, window_bounds = array<i64: 1, 16, 128>}, {pipeline_mode = #tpu.pipeline_mode<synchronous>, transform_indices = @transform_2, window_bounds = array<i64: 24, 48>}, {pipeline_mode = #tpu.pipeline_mode<synchronous>, transform_indices = @transform_3, window_bounds = array<i64: 24, 1>}, {transform_indices = @transform_4, window_bounds = array<i64: 1, 24, 128>}]} {
    %c0 = arith.constant 0 : index
    %c0_0 = arith.constant 0 : index
    %c0_1 = arith.constant 0 : index
    %0 = vector.load %arg2[%c0, %c0_0, %c0_1] : memref<1x16x128xf32, #tpu.memory_space<vmem>>, vector<1x16x128xf32>
    %1 = vector.shape_cast %0 : vector<1x16x128xf32> to vector<16x128xf32>
    %c0_2 = arith.constant 0 : index
    %c0_3 = arith.constant 0 : index
    %c0_4 = arith.constant 0 : index
    %2 = vector.load %arg3[%c0_2, %c0_3, %c0_4] : memref<1x16x128xf32, #tpu.memory_space<vmem>>, vector<1x16x128xf32>
    %3 = vector.shape_cast %2 : vector<1x16x128xf32> to vector<16x128xf32>
    %4 = tpu.concatenate %1, %3 in 1 : vector<16x128xf32>, vector<16x128xf32> -> vector<16x256xf32>
    %5 = vector.extract_strided_slice %4 {offsets = [0, 0], sizes = [16, 128], strides = [1, 1]} : vector<16x256xf32> to vector<16x128xf32>
    %6 = vector.extract_strided_slice %4 {offsets = [0, 3], sizes = [16, 128], strides = [1, 1]} : vector<16x256xf32> to vector<16x128xf32>
    %7 = vector.extract_strided_slice %4 {offsets = [0, 6], sizes = [16, 128], strides = [1, 1]} : vector<16x256xf32> to vector<16x128xf32>
    %8 = tpu.concatenate %5, %6, %7 in 0 : vector<16x128xf32>, vector<16x128xf32>, vector<16x128xf32> -> vector<48x128xf32>
    %c0_5 = arith.constant 0 : index
    %c0_6 = arith.constant 0 : index
    %9 = vector.load %arg4[%c0_5, %c0_6] : memref<24x48xf32, #tpu.memory_space<vmem>>, vector<24x48xf32>
    %cst = arith.constant dense<0.000000e+00> : vector<24x128xf32>
    %10 = tpu.matmul %9, %8, %cst {dimension_numbers = #tpu.dot_dimension_numbers<[1], [0], [0], [1], [0, 0, 1, 1], [], []>} : vector<24x48xf32>, vector<48x128xf32>, vector<24x128xf32> -> vector<24x128xf32>
    %c0_7 = arith.constant 0 : index
    %c0_8 = arith.constant 0 : index
    %11 = vector.load %arg5[%c0_7, %c0_8] : memref<24x1xf32, #tpu.memory_space<vmem>>, vector<24x1xf32>
    %12 = vector.broadcast %11 : vector<24x1xf32> to vector<24x128xf32>
    %13 = arith.addf %10, %12 : vector<24x128xf32>
    %c0_9 = arith.constant 0 : index
    %c0_10 = arith.constant 0 : index
    %c0_11 = arith.constant 0 : index
    %14 = vector.load %arg6[%c0_9, %c0_10, %c0_11] : memref<1x24x128xf32, #tpu.memory_space<vmem>>, vector<1x24x128xf32>
    %15 = vector.shape_cast %14 : vector<1x24x128xf32> to vector<24x128xf32>
    %16 = vector.shape_cast %13 : vector<24x128xf32> to vector<1x24x128xf32>
    tpu.vector_store %arg6[%c0_9, %c0_10, %c0_11], %16 {strides = array<i32>} : memref<1x24x128xf32, #tpu.memory_space<vmem>>, vector<1x24x128xf32>,
    return
  }
  func.func @transform_0(%arg0: i32, %arg1: i32) -> (i32, i32, i32) {
    %c0_i32 = arith.constant 0 : i32
    %c0_i32_0 = arith.constant 0 : i32
    return %arg0, %c0_i32, %arg1 : i32, i32, i32
  }
  func.func @transform_1(%arg0: i32, %arg1: i32) -> (i32, i32, i32) {
    %c1_i32 = arith.constant 1 : i32
    %0 = arith.addi %arg1, %c1_i32 : i32
    %c1_i32_0 = arith.constant 1 : i32
    %1 = arith.muli %0, %c1_i32_0 : i32
    %c0_i32 = arith.constant 0 : i32
    %c0_i32_1 = arith.constant 0 : i32
    return %arg0, %c0_i32, %1 : i32, i32, i32
  }
  func.func @transform_2(%arg0: i32, %arg1: i32) -> (i32, i32) {
    %c0_i32 = arith.constant 0 : i32
    %c0_i32_0 = arith.constant 0 : i32
    %c0_i32_1 = arith.constant 0 : i32
    return %c0_i32, %c0_i32_0 : i32, i32
  }
  func.func @transform_3(%arg0: i32, %arg1: i32) -> (i32, i32) {
    %c0_i32 = arith.constant 0 : i32
    %c0_i32_0 = arith.constant 0 : i32
    %c0_i32_1 = arith.constant 0 : i32
    return %c0_i32, %c0_i32_0 : i32, i32
  }
  func.func @transform_4(%arg0: i32, %arg1: i32) -> (i32, i32, i32) {
    %c0_i32 = arith.constant 0 : i32
    %c0_i32_0 = arith.constant 0 : i32
    return %arg0, %c0_i32, %arg1 : i32, i32, i32
  }
}

</mosaic_0001>

<bundles_post_ra>
// kernel: tpu_custom_call.1
= control target key start
LH: loop header
LB: loop body
LE: loop exit
PB: predicated region body
PF: predicated region fallthrough
CT: control target
= control target key end

     0   :  { %s1277_s0 = inlined_call_operand.hbm [shape: f32[2,16,512], index: 0, kind: input, shape index: {}]   ;;  %s1278_s1 = inlined_call_operand.hbm [shape: f32[2,16,512], index: 1, kind: input, shape index: {}]   ;;  %s1279_s2 = inlined_call_operand.vmem [shape: f32[24,48], index: 2, kind: input, shape index: {}]   ;;  %s1280_s3 = inlined_call_operand.vmem [shape: f32[24,1], index: 3, kind: input, shape index: {}]   ;;  %s1281_s4 = inlined_call_operand.hbm [shape: f32[2,24,300], index: 4, kind: output, shape index: {}]  }
   0x1   :  { %1289 = sst [smem:[#allocation17_spill]] %s1277_s0 }
   0x2   :  { %1290 = sst [smem:[#allocation18_spill]] %s1281_s4 }
   0x3   :  { %9 = vsyncpa [#allocation3], 0 }
   0x4   :  { %11 = vsyncpa [#allocation3 + $0x1], 0 }
   0x5   :  { %12 = vsyncpa [#allocation6], 0 }
   0x6   :  { %14 = vsyncpa [#allocation6 + $0x1], 0 }
   0x7   :  { %15 = vsyncpa [#allocation4], 0 }
   0x8   :  { %17 = vsyncpa [#allocation4 + $0x1], 0  ;;  %s962_s15 = smov 0   ;;  %s964_s16 = smov 0  }
   0x9   :  { %s966_s17 = smov 0   ;;  %s968_s18 = smov 0  }
   0xa   :  { %s970_s19 = smov 0   ;;  %s972_s20 = smov 0  }
   0xb   :  { %s974_s21 = smov 0   ;;  %s976_s22 = smov 0  }
   0xc   :  { %s978_s23 = smov 0   ;;  %s980_s24 = smov 0  }
   0xd   :  { %s982_s25 = smov 0  }
   0xe LB: > { %1291 = sst [smem:[#allocation11_spill]] %s905_s21  ;;  %s557_s26 = sadd.s32 4294967295, %s921_s25   ;;  %s921_s25 = sphi %s982_s25, %s23_s25   ;;  %s917_s24 = sphi %s980_s24, %s1317_s24   ;;  %s913_s23 = sphi %s978_s23, %s1316_s23   ;;  %s909_s22 = sphi %s976_s22, %s1315_s22   ;;  %s905_s21 = sphi %s974_s21, %s1314_s21   ;;  %s901_s20 = sphi %s972_s20, %s1323_s20   ;;  %s897_s19 = sphi %s970_s19, %s1322_s19   ;;  %s893_s18 = sphi %s968_s18, %s1321_s18   ;;  %s889_s17 = sphi %s966_s17, %s1320_s17   ;;  %s885_s16 = sphi %s964_s16, %s1319_s16   ;;  %s881_s15 = sphi %s962_s15, %s1318_s15  }
   0xf   : > { %1292 = sst [smem:[#allocation12_spill]] %s913_s23  ;;  %s558_s27 = sadd.s32 4294967294, %s921_s25  }
  0x10   : > { %1293 = sst [smem:[#allocation13_spill]] %s917_s24  ;;  %s32_s28 = sadd.s32 1, %s913_s23 }
  0x11   : > { %s35_s29 = sadd.s32 1, %s917_s24  ;;  %p33_p0 = scmp.ge.s32.totalorder %s32_s28, 3 }
  0x12   : > { %s44_s30 = sadd.s32 1, %s901_s20  ;;  %p51_p1 = scmp.ne.s32.totalorder %s901_s20, %s897_s19 }
  0x13   : > { %p1287_p2 = scmp.eq.s32.totalorder %s921_s25, 0  ;;  %s1325_s29 = smov (!%p33_p0, %s35_s29), %s917_s24 }
  0x14   : > { %s1025_s5 = scalar_select %p33_p0, 0, %s32_s28  }
  0x15   : > { %p1035_p3 = por %p1287_p2, %p51_p1  ;;  %p37_p4 = scmp.ge.s32.totalorder %s1325_s29, 2 }
  0x16   : > { %1294 = sst [smem:[#allocation14_spill]] %s1025_s5  ;;  %s40_s6 = ssub.s32 %s913_s23, %s1025_s5 }
  0x17   : > { %p57_p5 = scmp.ne.s32.totalorder %s897_s19, %s893_s18  ;;  %p1041_p6 = scmp.eq.s32.totalorder %s557_s26, 0 }
  0x18   : > { %s68_s9 = sadd.s32 1, %s1025_s5  ;;  %s1327_s29 = smov (%p37_p4, %s1325_s29), 0 }
  0x19   : > { %1297 = sst [smem:[#allocation15_spill]] %s1327_s29  ;;  %p1053_p7 = por %p1041_p6, %p57_p5 }
  0x1a   : > { %s70_s11 = ssub.s32 %s32_s28, %s68_s9  ;;  %s39_s12 = ssub.s32 %s917_s24, %s1327_s29 }
  0x1b   : > { %p155_p8 = scmp.eq.s32.totalorder %s557_s26, 5  ;;  %s41_s13 = sor.u32 %s40_s6, %s39_s12 }
  0x1c   : > { %s71_s14 = sor.u32 %s70_s11, %s39_s12  ;;  %p42_p9 = scmp.eq.s32.totalorder %s41_s13, 0 }
  0x1d   : > { %p1059_p10 = scmp.eq.s32.totalorder %s71_s14, 0  ;;  %p1066_p11 = por %p155_p8, %p51_p1 }
  0x1e   : > { %p161_p12 = scmp.eq.s32.totalorder %s558_s27, 5  ;;  %p637_p0 = scmp.lt.s32.totalorder %s921_s25, 6 }
  0x1f   : > { %s1300_s4 = scalar_select %p1066_p11, 1, 0 }
  0x20   : > { %s1071_s21 = scalar_select %p42_p9, %s901_s20, %s44_s30  }
  0x21   : > { %p1076_p13 = por %p161_p12, %p57_p5  ;;  %s187_s28 = sand.u32 1, %s901_s20  }
  0x22   : > { %1301 = sst [smem:[#allocation16_spill]] %s1071_s21  ;;  %s561_s6 = sshll.u32 %s187_s28, 4 }
  0x23   : > { %s1302_s26 = scalar_select %p1076_p13, 1, 0 }
  0x24   : > { %s562_s9 = sshll.u32 %s917_s24, 3  ;;  %s191_s12 = scalar_lea.vmem [#allocation2], %s561_s6 }
  0x25   : > { %s1084_s11 = sadd.s32 %s913_s23, %s562_s9  ;;  %s199_s13 = sshll.u32 %s191_s12, 4  ;;  %s200_s13 = int_to_ptr.vmem [resolvable:$true] %s199_s13 }
  0x26   : > { %s563_s14 = sshll.u32 %s1084_s11, 7  ;;  %s1303_s0 = sld [smem:[#allocation17_spill]] }
  0x27   : > { %p1096_p1 = pnand %p637_p0, %p1035_p3  ;;  %s188_s9 = scalar_lea.sflag [#allocation3], %s187_s28 }
  0x28   : > { %s753_s24 = scalar_lea.vmem %s200_s13, 256  ;;  %s923_s6 = smov [#allocation2]  }
  0x29   : > { %p742_p4 = pneg %p1096_p1  ;;  %p754_p5 = scmp.ne.s32.totalorder %s200_s13, %s753_s24 }
  0x2a   : > { %s758_s12 = sshll.u32 %s923_s6, 4  ;;  %s759_s12 = int_to_ptr.vmem [resolvable:$false] %s758_s12 }
  0x2b   : > { %p756_p8 = pnand %p754_p5, %p742_p4  ;;  %s760_s23 = scalar_lea.vmem %s759_s12, 512 }
  0x2c   : > { %s198_s29 = scalar_lea.hbm %s1303_s0, %s563_s14  ;;  %p761_p12 = scmp.lt.s32.totalorder %s200_s13, %s759_s12 }
  0x2d   : > { %p757_p9 = pneg %p756_p8  ;;  %p762_p2 = scmp.lt.s32.totalorder %s760_s23, %s753_s24 }
  0x2f   : > { %p763_p13 = por %p762_p2, %p761_p12 }
  0x31   : > { %p764_p11 = pnand %p763_p13, %p757_p9 }
  0x33   : > { %767 = shalt.err (!%p764_p11)
}
  0x34   : > { %s924_s7 = smov 512   ;;  %s925_s28 = smov 128  }
  0x35   : > { %s926_s23 = smov 8   ;;  %p567_p2 = scmp.ge.s32.totalorder %s921_s25, 1 }
  0x36   : > { %629 = dma.hbm_to_vmem [thread:$0]  (!%p1096_p1), %s198_s29, 256, %s200_s13, %s188_s9, %s924_s7, %s925_s28, %s926_s23  }
  0x37   : > { %p230_p3 = scmp.lt.s32.totalorder %s921_s25, 7  ;;  %s74_s27 = sadd.s32 1, %s889_s17 }
  0x38   : > { %s1117_s30 = scalar_select %p1059_p10, %s889_s17, %s74_s27  }
  0x39   : > { %p1109_p11 = pnand %p567_p2, %p230_p3  ;;  %p81_p13 = scmp.ne.s32.totalorder %s889_s17, %s885_s16 }
  0x3a   : > { %p87_p4 = scmp.ne.s32.totalorder %s885_s16, %s881_s15  ;;  %s209_s6 = sand.u32 1, %s889_s17  }
  0x3b   : > { %s1129_s0 = scalar_lea.hbm %s1278_s1, %s563_s14  ;;  %p1306_p1 = scmp.eq.s32.totalorder %s921_s25, 0 }
  0x3c   : > { %p1135_p8 = por %p87_p4, %p1041_p6  ;;  %s564_s5 = sshll.u32 %s209_s6, 4 }
  0x3d   : > { %p83_p5 = por %p81_p13, %p1306_p1  ;;  %s487_s13 = scalar_lea.hbm %s1129_s0, 128 }
  0x3e   : > { %s213_s9 = scalar_lea.vmem [#allocation5], %s564_s5  ;;  %s210_s11 = scalar_lea.sflag [#allocation6], %s209_s6 }
  0x3f   : > { %s222_s27 = sshll.u32 %s213_s9, 4  ;;  %p1142_p10 = pnand %p637_p0, %p83_p5  ;;  %s223_s27 = int_to_ptr.vmem [resolvable:$true] %s222_s27 }
  0x40   : > { %s781_s14 = scalar_lea.vmem %s223_s27, 256  ;;  %s927_s8 = smov [#allocation5]  }
  0x41   : > { %p770_p9 = pneg %p1142_p10  ;;  %p782_p12 = scmp.ne.s32.totalorder %s223_s27, %s781_s14 }
  0x42   : > { %s786_s21 = sshll.u32 %s927_s8, 4  ;;  %s787_s21 = int_to_ptr.vmem [resolvable:$false] %s786_s21 }
  0x43   : > { %p784_p6 = pnand %p782_p12, %p770_p9  ;;  %s788_s0 = scalar_lea.vmem %s787_s21, 512 }
  0x44   : > { %p789_p3 = scmp.lt.s32.totalorder %s223_s27, %s787_s21  ;;  %p790_p13 = scmp.lt.s32.totalorder %s788_s0, %s781_s14 }
  0x45   : > { %p785_p2 = pneg %p784_p6 }
  0x46   : > { %p791_p4 = por %p790_p13, %p789_p3 }
  0x48   : > { %p792_p0 = pnand %p791_p4, %p785_p2 }
  0x4a   : > { %795 = shalt.err (!%p792_p0)
}
  0x4b   : > { %632 = dma.hbm_to_vmem [thread:$0]  (!%p1142_p10), %s487_s13, 256, %s223_s27, %s210_s11, %s924_s7, %s925_s28, %s926_s23  }
  0x4c   : > { %234 = sbr.rel (%p1109_p11) target bundleno = 435 (0x1b3), region = 36  ;;  %s1156_s6 = sand.u32 (!%p1109_p11), 1, %s897_s19  }
  0x4d   : > { %s568_s12 = sshll.u32 (!%p1109_p11), %s1156_s6, 4  ;;  %s237_s5 = scalar_lea.sflag (!%p1109_p11), [#allocation3], %s1156_s6 }
  0x4e   : > { %s240_s9 = scalar_lea.vmem (!%p1109_p11), [#allocation2], %s568_s12 }
  0x51   : > { %868 = dma.done.wait (%p1053_p7), %s237_s5, 256  }
  0x52   : > { %870 = vsyncadd (%p1053_p7), %s237_s5, 4294967040  ;;  %s245_s7 = sand.u32 1, %s885_s16  }
  0x53   : > { %s569_s28 = sshll.u32 %s245_s7, 4  ;;  %s246_s23 = scalar_lea.sflag [#allocation6], %s245_s7 }
  0x54   : > { %s249_s24 = scalar_lea.vmem [#allocation5], %s569_s28 }
  0x55   : > { %872 = dma.done.wait (%p1135_p8), %s246_s23, 256  }
  0x56   : > { %874 = vsyncadd (%p1135_p8), %s246_s23, 4294967040  ;;  %v928_v0 = vmov 0.0   ;;  %v281_v1 = vld [vmem:[%s240_s9 + $0x8] sm:$0xff]  ;;  %v280_v2 = vld [vmem:[%s240_s9] sm:$0xff]  ;;  %s929_s10 = smov 122   ;;  %vm930_vm0 = vmmov 0  }
  0x57   : > { %585 = vmatprep.subr.mxu0 %v928_v0  ;;  %606 = vmatprep.subr.mxu1 %v928_v0  ;;  %v283_v3 = vld [vmem:[%s249_s24 + $0x8] sm:$0xff]  ;;  %v282_v4 = vld [vmem:[%s249_s24] sm:$0xff]  ;;  %s931_s29 = smov 125   ;;  %v932_v5 = vmov 0   ;;  %vm309_vm1 = vcmask 998400   ;;  %vm296_vm2 = vcmask 1022976  }
  0x58   : > { %305 = vrot.lane.b32.xlu0 %v281_v1, %s929_s10  ;;  %301 = vrot.lane.b32.xlu1 %v280_v2, %s929_s10  ;;  %v318_v6 = vld [vmem:[%s1280_s3 + $0x8] sm:$0xff]  ;;  %v317_v7 = vld [vmem:[%s1280_s3] sm:$0xff]  ;;  %s1309_s12 = sld [smem:[#allocation11_spill]]  ;;  %vm335_vm3 = vcmask 392192   ;;  %s619_s23 = smul.u32 9, %s909_s22 }
  0x59   : > { %600 = vmatprep.mubr.msk.f32.mxu1 %vm930_vm0, %v928_v0  ;;  %597 = vmatprep.mubr.msk.f32.mxu0 %vm930_vm0, %v928_v0  ;;  %v319_v8 = vld [vmem:[%s1280_s3 + $0x10] sm:$0xff]  ;;  %v315_v21 = vld [vmem:[%s1279_s2 + $0x8] sm:$0xff]  ;;  %v314_v22 = vld [vmem:[%s1279_s2] sm:$0xff]  ;;  %s618_s24 = smul.u32 24, %s1156_s6  ;;  %s1310_s11 = sld [smem:[#allocation18_spill]] }
  0x5a   : > { %739 = vset.pattern.permute.xlu1 %v932_v5  ;;  %738 = vset.pattern.permute.xlu0 %v932_v5  ;;  %v316_v23 = vld [vmem:[%s1279_s2 + $0x10] sm:$0xff]  ;;  %s429_s8 = scalar_lea.sflag [#allocation4], %s1156_s6  ;;  %p1311_p11 = scmp.ne.s32.totalorder %s1300_s4, 0 }
  0x5b   : > { %s933_s0 = smov [#allocation7]  }
  0x5c   : > { %307 = vrot.lane.b32.xlu0 %v283_v3, %s929_s10  ;;  %303 = vrot.lane.b32.xlu1 %v282_v4, %s929_s10 }
  0x5e   : > { %s440_s10 = sadd.s32 %s1309_s12, %s619_s23  ;;  %s801_s12 = sshll.u32 %s933_s0, 4  ;;  %s802_s12 = int_to_ptr.vmem [resolvable:$false] %s801_s12 }
  0x5f   : > { %s573_s27 = sshll.u32 %s440_s10, 7  ;;  %s803_s5 = scalar_lea.vmem %s802_s12, 768 }
  0x60   : > { %292 = vrot.lane.b32.xlu0 %v281_v1, %s931_s29  ;;  %294 = vrot.lane.b32.xlu1 %v283_v3, %s931_s29  ;;  %s1215_s14 = scalar_lea.hbm %s1310_s11, %s573_s27 }
  0x64   : > { %288 = vrot.lane.b32.xlu0 %v280_v2, %s931_s29  ;;  %290 = vrot.lane.b32.xlu1 %v282_v4, %s931_s29  ;;  %s278_s29 = scalar_lea.vmem [#allocation7], %s618_s24 }
  0x65   : > { %s443_s13 = sshll.u32 %s278_s29, 4  ;;  %s1210_s13 = int_to_ptr.vmem [resolvable:$true] %s443_s13 }
  0x66   : > { %s797_s21 = scalar_lea.vmem %s1210_s13, 384  ;;  %p804_p8 = scmp.lt.s32.totalorder %s1210_s13, %s802_s12 }
  0x67   : > { %p798_p7 = scmp.ne.s32.totalorder %s1210_s13, %s797_s21  ;;  %p805_p10 = scmp.lt.s32.totalorder %s803_s5, %s797_s21 }
  0x68   : > { %327 = vperm.xlu1 %739, %v318_v6   ;;  %322 = vperm.xlu0 %738, %v317_v7  }
  0x69   : > { %p799_p1 = pnand %p798_p7, %p1311_p11  ;;  %p806_p9 = por %p805_p10, %p804_p8 }
  0x6b   : > { %p800_p5 = pneg %p799_p1 }
  0x6c   : > { %332 = vperm.xlu1 %739, %v319_v8  }
  0x6d   : > { %p807_p12 = pnand %p806_p9, %p800_p5 }
  0xca   : > { %v306_v9 = vpop.permute.xlu0 %305  ;;  %v302_v10 = vpop.permute.xlu1 %301 }
  0xce   : > { %v308_v11 = vpop.permute.xlu0 %307  ;;  %v304_v12 = vpop.permute.xlu1 %303 }
  0xcf   : > { %v311_v13 = vsel %vm309_vm1, %v306_v9, %v308_v11  ;;  %v310_v14 = vsel %vm309_vm1, %v302_v10, %v304_v12 }
  0xd0   : > { %586 = vmatpush3.msra.mxu0 %v311_v13  ;;  %612 = vmatpush3.msra.mxu1 %v311_v13 }
  0xd1   : > { %587 = vmatprep.subr.mxu0 %v928_v0  ;;  %607 = vmatprep.subr.mxu1 %v928_v0 }
  0xd2   : > { %v293_v15 = vpop.permute.xlu0 %292  ;;  %588 = vmatpush3.msra.mxu0 %v310_v14  ;;  %613 = vmatpush3.msra.mxu1 %v310_v14  ;;  %v295_v16 = vpop.permute.xlu1 %294 }
  0xd3   : > { %589 = vmatprep.subr.mxu0 %v928_v0  ;;  %608 = vmatprep.subr.mxu1 %v928_v0  ;;  %v298_v17 = vsel %vm296_vm2, %v293_v15, %v295_v16 }
  0xd4   : > { %590 = vmatpush3.msra.mxu0 %v298_v17  ;;  %614 = vmatpush3.msra.mxu1 %v298_v17 }
  0xd5   : > { %591 = vmatprep.subr.mxu0 %v928_v0  ;;  %609 = vmatprep.subr.mxu1 %v928_v0 }
  0xd6   : > { %v289_v18 = vpop.permute.xlu0 %288  ;;  %v291_v19 = vpop.permute.xlu1 %290 }
  0xd7   : > { %v297_v20 = vsel %vm296_vm2, %v289_v18, %v291_v19 }
  0xd8   : > { %592 = vmatpush3.msra.mxu0 %v297_v20  ;;  %615 = vmatpush3.msra.mxu1 %v297_v20 }
  0xd9   : > { %610 = vmatprep.subr.mxu1 %v928_v0  ;;  %593 = vmatprep.subr.mxu0 %v928_v0 }
  0xda   : > { %616 = vmatpush3.msra.mxu1 %v281_v1  ;;  %594 = vmatpush3.msra.mxu0 %v281_v1 }
  0xdb   : > { %611 = vmatprep.subr.mxu1 %v928_v0  ;;  %595 = vmatprep.subr.mxu0 %v928_v0 }
  0xdc   : > { %617 = vmatpush3.msra.mxu1 %v280_v2  ;;  %596 = vmatpush3.msra.mxu0 %v280_v2 }
  0xdd   : > { %601 = vmatmul.mubr.msk.f32.vlgmr.msra.gmra.mxu1 %vm335_vm3, %v315_v21  ;;  %598 = vmatmul.mubr.msk.f32.vlgmr.msra.gmra.mxu0 %vm335_vm3, %v314_v22 }
  0xde   : > { %603 = vmatprep.mubr.msk.f32.mxu1 %vm930_vm0, %v928_v0 }
  0xe1   : > { %604 = vmatmul.mubr.msk.f32.gmra.mxu1 %vm335_vm3, %v316_v23 }
  0xe3   : > { %v328_v24 = vpop.permute.xlu1 %327  ;;  %v323_v25 = vpop.permute.xlu0 %322 }
  0xe7   : > { %v333_v32 = vpop.permute.xlu1 %332 }
 0x19d   : > { %v416_v26 = vpop.f32.mrf.mxu1  ;;  %v411_v27 = vpop.f32.mrf.mxu0 }
 0x19e   : > { %v417_v28 = vadd.f32 %v416_v26, %v328_v24  ;;  %v412_v29 = vadd.f32 %v411_v27, %v323_v25 }
 0x19f   : > { %v602_v30 = vpop.f32.mrf.mxu1  ;;  %v599_v31 = vpop.f32.mrf.mxu0 }
 0x1a0   : > { %426 = vst [vmem:[%s278_s29 + $0x8] sm:$0xff] %v417_v28  ;;  %425 = vst [vmem:[%s278_s29] sm:$0xff] %v412_v29 }
 0x1a1   : > { %v421_v33 = vpop.f32.mrf.mxu1 }
 0x1a2   : > { %v422_v34 = vadd.f32 %v421_v33, %v333_v32 }
 0x1a3   : > { %v605_v35 = vpop.f32.mrf.mxu1 }
 0x1a4   : > { %427 = vst [vmem:[%s278_s29 + $0x10] sm:$0xff] %v422_v34 }
 0x1a5   : > { %810 = shalt.err (!%p807_p12)
}
 0x1a6   : > { %s811_s9 = scalar_lea.hbm %s1215_s14, 384  ;;  %s815_s23 = scalar_lea.hbm %s1310_s11, 2304 }
 0x1a7   : > { %p812_p6 = scmp.ne.s32.totalorder %s1215_s14, %s811_s9  ;;  %p816_p13 = scmp.lt.s32.totalorder %s1215_s14, %s1310_s11 }
 0x1a8   : > { %p817_p4 = scmp.lt.s32.totalorder %s815_s23, %s811_s9 }
 0x1a9   : > { %p813_p2 = pnand %p812_p6, %p1311_p11 }
 0x1aa   : > { %p818_p0 = por %p817_p4, %p816_p13 }
 0x1ab   : > { %p814_p3 = pneg %p813_p2 }
 0x1ad   : > { %p819_p7 = pnand %p818_p0, %p814_p3 }
 0x1af   : > { %822 = shalt.err (!%p819_p7)
}
 0x1b0   : > { %s934_s29 = smov 128   ;;  %s935_s27 = smov 384  }
 0x1b1   : > { %s936_s22 = smov 8  }
 0x1b2   : > { %624 = dma.vmem_to_hbm [thread:$0]  (%p1311_p11), %s1210_s13, 384, %s1215_s14, %s429_s8, %s934_s29, %s935_s27, %s936_s22  }
 0x1b3 PF: > { %p638_p1 = scmp.ge.s32.totalorder %s921_s25, 2  ;;  %s458_s15 = sand.u32 1, %s893_s18  }
 0x1b4   : > { %p1312_p5 = scmp.ne.s32.totalorder %s1302_s26, 0  ;;  %s459_s21 = scalar_lea.sflag [#allocation4], %s458_s15 }
 0x1b6   : > { %p634_p8 = pnand %p638_p1, %p1312_p5 }
 0x1b8   : > { %p635_p10 = pneg %p634_p8 }
 0x1ba   : > { %876 = dma.done.wait (%p635_p10), %s459_s21, 384  }
 0x1bb   : > { %878 = vsyncadd (%p635_p10), %s459_s21, 4294966912  ;;  %s23_s25 = sadd.s32 1, %s921_s25   ;;  %s1313_s4 = sld [smem:[#allocation16_spill]] }
 0x1bc   : > { %p20_p9 = scmp.ge.s32.totalorder %s23_s25, 8   ;;  %s1314_s21 = sld [smem:[#allocation12_spill]] }
 0x1bd   : > { %s1315_s22 = sld [smem:[#allocation13_spill]]  ;;  %s1318_s15 = smov %s885_s16 }
 0x1be   : > { %s1316_s23 = sld [smem:[#allocation14_spill]]  ;;  %s1319_s16 = smov %s889_s17 }
 0x1bf   : > { %s1317_s24 = sld [smem:[#allocation15_spill]]  ;;  %s1320_s17 = smov %s1117_s30 }
 0x1c0   : > { %s1321_s18 = smov %s897_s19  ;;  %s1322_s19 = smov %s901_s20 }
 0x1c1   : > { %s1323_s20 = smov %s1313_s4  ;;  %22 = sbr.rel (!%p20_p9) target bundleno = 14 (0xe), region = 94 }
 0x1c6   :  { %464 = vsyncpa [#allocation3], 1 }
 0x1c7   :  { %466 = vsyncpa [#allocation3 + $0x1], 1 }
 0x1c8   :  { %467 = vsyncpa [#allocation6], 1 }
 0x1c9   :  { %469 = vsyncpa [#allocation6 + $0x1], 1 }
 0x1ca   :  { %470 = vsyncpa [#allocation4], 1 }
 0x1cb   :  { %472 = vsyncpa [#allocation4 + $0x1], 1 }

</bundles_post_ra>
